<compile_context>
chip_gen: v7x
topology: tpu7x:2x2x1
jax: 0.10.0
libtpu: 0.0.40
codegen_flags: <defaults>
</compile_context>

<pallas_src>
import functools

import jax
import jax.numpy as jnp
from jax.experimental import pallas as pl
from jax.experimental.pallas import tpu as pltpu

LANES = 128
CHUNK_ROWS = 64           # inner-loop chunk == accumulator height; multiple of the int8
                          # sublane tile (32), so every streamed dtype's layout is legal.
MAX_BLOCK_ROWS = 8192     # (8192,128) f32 block = 4 MiB/input -> ~19 MiB double-buffered.
VMEM_LIMIT_BYTES = 40 * 1024 * 1024   # > 2*(4+4+1) MiB block set, < v7x's 64 MiB physical.
MAX_CORE_SPLITS = 2       # one "parallel" grid entry per TensorCore (dual-TC on v7x).


def _num_tensorcores() -> int:
    """Best-effort TensorCores-per-chip query (2 on dual-TC chips, else 1)."""
    try:
        info = pltpu.get_tpu_info()
    except Exception:
        return 1
    for name in ("num_tensorcores", "tensorcores_per_chip", "num_cores_per_chip",
                 "num_cores", "core_count"):
        v = getattr(info, name, None)
        if v is None:
            continue
        try:
            v = int(v)
        except Exception:
            continue
        if v > 0:
            return v
    return 1


@functools.lru_cache(maxsize=None)
def _bool_bitcast_supported() -> bool:
    """Whether bool->int8 can be a free 1-byte bitcast (vs a materializing astype)."""
    try:
        out = jax.lax.bitcast_convert_type(jnp.zeros((8,), jnp.bool_), jnp.int8)
        jax.block_until_ready(out)
        return True
    except Exception:
        return False


def _masked_smooth_l1_kernel(pred_ref, target_ref, mask_ref, out_ref, *,
                             block_rows, blocks_per_core, valid_rows):
    c = pl.program_id(0)   # core-split index ("parallel")
    i = pl.program_id(1)   # streaming reduction step ("arbitrary")

    @pl.when(i == 0)
    def _init():
        out_ref[...] = jnp.zeros_like(out_ref)

    # Unclamped block index: overhang steps (clamped by the index_map to re-read the
    # last real block) get base_row >= valid_rows and are fully masked out below.
    base_row = (c * blocks_per_core + i) * block_rows
    num_chunks = block_rows // CHUNK_ROWS

    def accumulate(masked):
        # 64-row chunks keep every intermediate in vregs (no VMEM round-trips) and give
        # 16 independent vreg accumulation chains, so the VPU latency stays hidden
        # under the block DMA on all generations.
        def body(j, carry):
            acc_loss, acc_mask = carry
            r0 = pl.multiple_of(j * CHUNK_ROWS, CHUNK_ROWS)
            p = pred_ref[pl.ds(r0, CHUNK_ROWS), :].astype(jnp.float32)
            t = target_ref[pl.ds(r0, CHUNK_ROWS), :].astype(jnp.float32)
            a = jnp.abs(p - t)
            d = jnp.minimum(a, 1.0)
            sl1 = d * (a - 0.5 * d)          # == 0.5*a^2 if a < 1 else a - 0.5  (beta=1)
            mf = mask_ref[pl.ds(r0, CHUNK_ROWS), :].astype(jnp.float32)
            if masked:
                # Ragged / overhang block: rows at or beyond valid_rows may hold
                # HBM-out-of-bounds garbage (possibly NaN/Inf) -> select BEFORE the
                # multiply so NaN*0 never happens.
                row = jax.lax.broadcasted_iota(jnp.int32, (CHUNK_ROWS, 1), 0)
                valid = (base_row + r0 + row) < valid_rows
                mf = jnp.where(valid, mf, 0.0)
                sl1 = jnp.where(valid, sl1, 0.0)
            return acc_loss + sl1 * mf, acc_mask + mf

        zero = jnp.zeros((CHUNK_ROWS, LANES), jnp.float32)
        acc_loss, acc_mask = jax.lax.fori_loop(0, num_chunks, body, (zero, zero))
        out_ref[0, 0, :, :] += acc_loss
        out_ref[0, 1, :, :] += acc_mask

    # Fast path: interior blocks sit entirely inside the (zero-padded) valid region, so
    # no per-row iota/compare/select is needed.  NOTE: this relies on the wrapper
    # zero-padding pred/target/mask up to valid_rows*LANES elements (zeros contribute 0
    # to both sums and cannot produce NaN).
    fully_valid = (base_row + block_rows) <= valid_rows

    @pl.when(fully_valid)
    def _interior():
        accumulate(masked=False)

    @pl.when(jnp.logical_not(fully_valid))
    def _ragged():
        accumulate(masked=True)


def masked_smooth_l1_loss(pred, target, target_mask):
    """pred, target: (B,1,H,W) float; target_mask: (B,1,H,W) bool. Returns scalar loss.

    Matches the PyTorch reference exactly, including returning NaN (0/0) when the mask
    is all-False.
    """
    n = pred.size
    rows_p = pl.cdiv(pl.cdiv(n, LANES), CHUNK_ROWS) * CHUNK_ROWS
    pad = rows_p * LANES - n

    def prep_float(x):
        if x.dtype not in (jnp.float32, jnp.bfloat16):
            x = x.astype(jnp.float32)    # bf16 streams at native width, upcast on-chip
        flat = x.reshape(-1)
        if pad:
            # Zero padding is REQUIRED for the in-kernel fast path: padded rows are
            # treated as valid, and zeros contribute nothing to either sum.
            # TODO(synk): for large unaligned inputs, split an aligned bulk + tiny JAX
            # tail instead of this full-copy pad.
            flat = jnp.pad(flat, (0, pad))
        return flat.reshape(rows_p, LANES)

    def prep_mask(m):
        if m.dtype != jnp.int8:
            if m.dtype == jnp.bool_ and _bool_bitcast_supported():
                m = jax.lax.bitcast_convert_type(m, jnp.int8)   # free 1-byte reinterpret
            else:
                m = m.astype(jnp.int8)
        flat = m.reshape(-1)
        if pad:
            flat = jnp.pad(flat, (0, pad))
        return flat.reshape(rows_p, LANES)

    p2d = prep_float(pred)
    t2d = prep_float(target)
    m2d = prep_mask(target_mask)

    block_rows = min(MAX_BLOCK_ROWS, rows_p)        # always a multiple of CHUNK_ROWS
    num_blocks = pl.cdiv(rows_p, block_rows)

    num_core_splits = min(MAX_CORE_SPLITS, _num_tensorcores(), num_blocks)
    if num_core_splits > 1 and num_blocks % num_core_splits != 0 and num_blocks < 4:
        num_core_splits = 1   # the duplicate clamped-block DMA would outweigh the split
    blocks_per_core = pl.cdiv(num_blocks, num_core_splits)

    kernel = functools.partial(
        _masked_smooth_l1_kernel,
        block_rows=block_rows,
        blocks_per_core=blocks_per_core,
        valid_rows=rows_p,
    )

    def in_map(c, i):
        # Clamp so overhang steps DMA a real block; their contribution is masked to
        # zero in-kernel (base_row there uses the unclamped index).
        return (jnp.minimum(c * blocks_per_core + i, num_blocks - 1), 0)

    in_spec = pl.BlockSpec((block_rows, LANES), in_map)

    partials = pl.pallas_call(
        kernel,
        out_shape=jax.ShapeDtypeStruct(
            (num_core_splits, 2, CHUNK_ROWS, LANES), jnp.float32),
        grid_spec=pltpu.PrefetchScalarGridSpec(
            num_scalar_prefetch=0,
            grid=(num_core_splits, blocks_per_core),
            in_specs=[in_spec, in_spec, in_spec],
            out_specs=pl.BlockSpec((1, 2, CHUNK_ROWS, LANES),
                                   lambda c, i: (c, 0, 0, 0)),
        ),
        compiler_params=pltpu.CompilerParams(
            dimension_semantics=("parallel", "arbitrary"),
            vmem_limit_bytes=VMEM_LIMIT_BYTES,
        ),
    )(p2d, t2d, m2d)

    sums = jnp.sum(partials, axis=(0, 2, 3))   # (2,) = [masked-loss sum, mask count]
    # Same semantics as the PyTorch reference: all-False mask yields NaN (0/0).
    return sums[0] / sums[1]


def _reference(pred, target, mask):
    diff = pred.astype(jnp.float32) - target.astype(jnp.float32)
    absd = jnp.abs(diff)
    sl1 = jnp.where(absd < 1.0, 0.5 * diff * diff, absd - 0.5)
    mf = mask.astype(jnp.float32)
    return (sl1 * mf).sum() / mf.sum()


if __name__ == "__main__":
    key = jax.random.PRNGKey(0)
    kp, kt, km = jax.random.split(key, 3)
    B, C, H, W = 2, 1, 16, 16
    pred = jax.random.normal(kp, (B, C, H, W), dtype=jnp.float32) * 2.0
    target = jax.random.normal(kt, (B, C, H, W), dtype=jnp.float32)
    target_mask = jax.random.bernoulli(km, p=0.5, shape=(B, C, H, W))

    loss = jax.block_until_ready(masked_smooth_l1_loss(pred, target, target_mask))
    ref = jax.block_until_ready(_reference(pred, target, target_mask))
    assert jnp.allclose(loss, ref, rtol=1e-5, atol=1e-6), (loss, ref)

    print("KERNEL_OK")
</pallas_src>

<mosaic_0001>
module attributes {stable_mosaic.version = 11 : i64} {
  func.func @_masked_smooth_l1_kernel(%arg0: i32, %arg1: i32, %arg2: memref<64x128xf32, #tpu.memory_space<vmem>>, %arg3: memref<64x128xf32, #tpu.memory_space<vmem>>, %arg4: memref<64x128xi8, #tpu.memory_space<vmem>>, %arg5: memref<1x2x64x128xf32, #tpu.memory_space<vmem>>) attributes {dimension_semantics = [#tpu.dimension_semantics<parallel>, #tpu.dimension_semantics<arbitrary>], iteration_bounds = array<i64: 1, 1>, scalar_prefetch = 0 : i64, scratch_operands = 0 : i64, tpu.core_type = #tpu.core_type<tc>, window_params = [{transform_indices = @transform_0, window_bounds = array<i64: 64, 128>}, {transform_indices = @transform_1, window_bounds = array<i64: 64, 128>}, {transform_indices = @transform_2, window_bounds = array<i64: 64, 128>}, {transform_indices = @transform_3, window_bounds = array<i64: 1, 2, 64, 128>}]} {
    %c0_i32 = arith.constant 0 : i32
    %0 = arith.cmpi eq, %arg1, %c0_i32 : i32
    %1 = arith.extui %0 : i1 to i32
    %c0_i32_0 = arith.constant 0 : i32
    %2 = arith.cmpi ne, %1, %c0_i32_0 : i32
    scf.if %2 {
      %cst = arith.constant 0.000000e+00 : f32
      %13 = vector.broadcast %cst : f32 to vector<1x2x64x128xf32>
      %c0 = arith.constant 0 : index
      %c0_5 = arith.constant 0 : index
      %c0_6 = arith.constant 0 : index
      %c0_7 = arith.constant 0 : index
      %14 = vector.load %arg5[%c0, %c0_5, %c0_6, %c0_7] : memref<1x2x64x128xf32, #tpu.memory_space<vmem>>, vector<1x2x64x128xf32>
      tpu.vector_store %arg5[%c0, %c0_5, %c0_6, %c0_7], %13 {strides = array<i32>} : memref<1x2x64x128xf32, #tpu.memory_space<vmem>>, vector<1x2x64x128xf32>,
    } else {
    }
    %c1_i32 = arith.constant 1 : i32
    %3 = arith.muli %arg0, %c1_i32 : i32
    %4 = arith.addi %3, %arg1 : i32
    %c64_i32 = arith.constant 64 : i32
    %5 = arith.muli %4, %c64_i32 : i32
    %c64_i32_1 = arith.constant 64 : i32
    %6 = arith.addi %5, %c64_i32_1 : i32
    %c64_i32_2 = arith.constant 64 : i32
    %7 = arith.cmpi sle, %6, %c64_i32_2 : i32
    %8 = arith.extui %7 : i1 to i32
    %c0_i32_3 = arith.constant 0 : i32
    %9 = arith.cmpi ne, %8, %c0_i32_3 : i32
    scf.if %9 {
      %cst = arith.constant 0.000000e+00 : f32
      %13 = vector.broadcast %cst : f32 to vector<64x128xf32>
      %c0_i32_5 = arith.constant 0 : i32
      %c64_i32_6 = arith.constant 64 : i32
      %14 = arith.muli %c0_i32_5, %c64_i32_6 : i32
      %15 = tpu.assume_multiple %14, 64 : i32
      %16 = arith.index_cast %15 : i32 to index
      %c0 = arith.constant 0 : index
      %17 = vector.load %arg2[%16, %c0] : memref<64x128xf32, #tpu.memory_space<vmem>>, vector<64x128xf32>
      %18 = arith.index_cast %15 : i32 to index
      %c0_7 = arith.constant 0 : index
      %19 = vector.load %arg3[%18, %c0_7] : memref<64x128xf32, #tpu.memory_space<vmem>>, vector<64x128xf32>
      %20 = arith.subf %17, %19 : vector<64x128xf32>
      %21 = math.absf %20 : vector<64x128xf32>
      %cst_8 = arith.constant 1.000000e+00 : f32
      %22 = vector.broadcast %cst_8 : f32 to vector<64x128xf32>
      %23 = arith.minimumf %21, %22 : vector<64x128xf32>
      %cst_9 = arith.constant 5.000000e-01 : f32
      %24 = vector.broadcast %cst_9 : f32 to vector<64x128xf32>
      %25 = arith.mulf %24, %23 : vector<64x128xf32>
      %26 = arith.subf %21, %25 : vector<64x128xf32>
      %27 = arith.mulf %23, %26 : vector<64x128xf32>
      %28 = arith.index_cast %15 : i32 to index
      %c0_10 = arith.constant 0 : index
      %29 = vector.load %arg4[%28, %c0_10] : memref<64x128xi8, #tpu.memory_space<vmem>>, vector<64x128xi8>
      %30 = arith.sitofp %29 : vector<64x128xi8> to vector<64x128xf32>
      %31 = arith.mulf %27, %30 : vector<64x128xf32>
      %32 = arith.addf %13, %31 : vector<64x128xf32>
      %33 = arith.addf %13, %30 : vector<64x128xf32>
      %c1_i32_11 = arith.constant 1 : i32
      %c0_12 = arith.constant 0 : index
      %c0_13 = arith.constant 0 : index
      %c0_14 = arith.constant 0 : index
      %c0_15 = arith.constant 0 : index
      %34 = vector.load %arg5[%c0_12, %c0_13, %c0_14, %c0_15] : memref<1x2x64x128xf32, #tpu.memory_space<vmem>>, vector<1x1x64x128xf32>
      %35 = vector.shape_cast %34 : vector<1x1x64x128xf32> to vector<64x128xf32>
      %36 = arith.addf %35, %32 : vector<64x128xf32>
      %c0_16 = arith.constant 0 : index
      %c0_17 = arith.constant 0 : index
      %c0_18 = arith.constant 0 : index
      %c0_19 = arith.constant 0 : index
      %37 = vector.load %arg5[%c0_16, %c0_17, %c0_18, %c0_19] : memref<1x2x64x128xf32, #tpu.memory_space<vmem>>, vector<1x1x64x128xf32>
      %38 = vector.shape_cast %37 : vector<1x1x64x128xf32> to vector<64x128xf32>
      %39 = vector.shape_cast %36 : vector<64x128xf32> to vector<1x1x64x128xf32>
      tpu.vector_store %arg5[%c0_16, %c0_17, %c0_18, %c0_19], %39 {strides = array<i32>} : memref<1x2x64x128xf32, #tpu.memory_space<vmem>>, vector<1x1x64x128xf32>,
      %c0_20 = arith.constant 0 : index
      %c1 = arith.constant 1 : index
      %c0_21 = arith.constant 0 : index
      %c0_22 = arith.constant 0 : index
      %40 = vector.load %arg5[%c0_20, %c1, %c0_21, %c0_22] : memref<1x2x64x128xf32, #tpu.memory_space<vmem>>, vector<1x1x64x128xf32>
      %41 = vector.shape_cast %40 : vector<1x1x64x128xf32> to vector<64x128xf32>
      %42 = arith.addf %41, %33 : vector<64x128xf32>
      %c0_23 = arith.constant 0 : index
      %c1_24 = arith.constant 1 : index
      %c0_25 = arith.constant 0 : index
      %c0_26 = arith.constant 0 : index
      %43 = vector.load %arg5[%c0_23, %c1_24, %c0_25, %c0_26] : memref<1x2x64x128xf32, #tpu.memory_space<vmem>>, vector<1x1x64x128xf32>
      %44 = vector.shape_cast %43 : vector<1x1x64x128xf32> to vector<64x128xf32>
      %45 = vector.shape_cast %42 : vector<64x128xf32> to vector<1x1x64x128xf32>
      tpu.vector_store %arg5[%c0_23, %c1_24, %c0_25, %c0_26], %45 {strides = array<i32>} : memref<1x2x64x128xf32, #tpu.memory_space<vmem>>, vector<1x1x64x128xf32>,
    } else {
    }
    %true = arith.constant true
    %10 = arith.xori %7, %true : i1
    %11 = arith.extui %10 : i1 to i32
    %c0_i32_4 = arith.constant 0 : i32
    %12 = arith.cmpi ne, %11, %c0_i32_4 : i32
    scf.if %12 {
      %cst = arith.constant 0.000000e+00 : f32
      %13 = vector.broadcast %cst : f32 to vector<64x128xf32>
      %c0_i32_5 = arith.constant 0 : i32
      %c64_i32_6 = arith.constant 64 : i32
      %14 = arith.muli %c0_i32_5, %c64_i32_6 : i32
      %15 = tpu.assume_multiple %14, 64 : i32
      %16 = arith.index_cast %15 : i32 to index
      %c0 = arith.constant 0 : index
      %17 = vector.load %arg2[%16, %c0] : memref<64x128xf32, #tpu.memory_space<vmem>>, vector<64x128xf32>
      %18 = arith.index_cast %15 : i32 to index
      %c0_7 = arith.constant 0 : index
      %19 = vector.load %arg3[%18, %c0_7] : memref<64x128xf32, #tpu.memory_space<vmem>>, vector<64x128xf32>
      %20 = arith.subf %17, %19 : vector<64x128xf32>
      %21 = math.absf %20 : vector<64x128xf32>
      %cst_8 = arith.constant 1.000000e+00 : f32
      %22 = vector.broadcast %cst_8 : f32 to vector<64x128xf32>
      %23 = arith.minimumf %21, %22 : vector<64x128xf32>
      %cst_9 = arith.constant 5.000000e-01 : f32
      %24 = vector.broadcast %cst_9 : f32 to vector<64x128xf32>
      %25 = arith.mulf %24, %23 : vector<64x128xf32>
      %26 = arith.subf %21, %25 : vector<64x128xf32>
      %27 = arith.mulf %23, %26 : vector<64x128xf32>
      %28 = arith.index_cast %15 : i32 to index
      %c0_10 = arith.constant 0 : index
      %29 = vector.load %arg4[%28, %c0_10] : memref<64x128xi8, #tpu.memory_space<vmem>>, vector<64x128xi8>
      %30 = arith.sitofp %29 : vector<64x128xi8> to vector<64x128xf32>
      %31 = tpu.iota {dimensions = array<i32: 0>} : vector<64x1xi32>
      %32 = arith.addi %5, %15 : i32
      %33 = vector.broadcast %32 : i32 to vector<64x1xi32>
      %34 = arith.addi %33, %31 : vector<64x1xi32>
      %c64_i32_11 = arith.constant 64 : i32
      %35 = vector.broadcast %c64_i32_11 : i32 to vector<64x1xi32>
      %36 = arith.cmpi slt, %34, %35 : vector<64x1xi32>
      %cst_12 = arith.constant 0.000000e+00 : f32
      %37 = vector.shape_cast %36 : vector<64x1xi1> to vector<64x1xi1>
      %38 = vector.broadcast %37 : vector<64x1xi1> to vector<64x128xi1>
      %39 = vector.broadcast %cst_12 : f32 to vector<64x128xf32>
      %40 = arith.select %38, %30, %39 : vector<64x128xi1>, vector<64x128xf32>
      %cst_13 = arith.constant 0.000000e+00 : f32
      %41 = vector.shape_cast %36 : vector<64x1xi1> to vector<64x1xi1>
      %42 = vector.broadcast %41 : vector<64x1xi1> to vector<64x128xi1>
      %43 = vector.broadcast %cst_13 : f32 to vector<64x128xf32>
      %44 = arith.select %42, %27, %43 : vector<64x128xi1>, vector<64x128xf32>
      %45 = arith.mulf %44, %40 : vector<64x128xf32>
      %46 = arith.addf %13, %45 : vector<64x128xf32>
      %47 = arith.addf %13, %40 : vector<64x128xf32>
      %c1_i32_14 = arith.constant 1 : i32
      %c0_15 = arith.constant 0 : index
      %c0_16 = arith.constant 0 : index
      %c0_17 = arith.constant 0 : index
      %c0_18 = arith.constant 0 : index
      %48 = vector.load %arg5[%c0_15, %c0_16, %c0_17, %c0_18] : memref<1x2x64x128xf32, #tpu.memory_space<vmem>>, vector<1x1x64x128xf32>
      %49 = vector.shape_cast %48 : vector<1x1x64x128xf32> to vector<64x128xf32>
      %50 = arith.addf %49, %46 : vector<64x128xf32>
      %c0_19 = arith.constant 0 : index
      %c0_20 = arith.constant 0 : index
      %c0_21 = arith.constant 0 : index
      %c0_22 = arith.constant 0 : index
      %51 = vector.load %arg5[%c0_19, %c0_20, %c0_21, %c0_22] : memref<1x2x64x128xf32, #tpu.memory_space<vmem>>, vector<1x1x64x128xf32>
      %52 = vector.shape_cast %51 : vector<1x1x64x128xf32> to vector<64x128xf32>
      %53 = vector.shape_cast %50 : vector<64x128xf32> to vector<1x1x64x128xf32>
      tpu.vector_store %arg5[%c0_19, %c0_20, %c0_21, %c0_22], %53 {strides = array<i32>} : memref<1x2x64x128xf32, #tpu.memory_space<vmem>>, vector<1x1x64x128xf32>,
      %c0_23 = arith.constant 0 : index
      %c1 = arith.constant 1 : index
      %c0_24 = arith.constant 0 : index
      %c0_25 = arith.constant 0 : index
      %54 = vector.load %arg5[%c0_23, %c1, %c0_24, %c0_25] : memref<1x2x64x128xf32, #tpu.memory_space<vmem>>, vector<1x1x64x128xf32>
      %55 = vector.shape_cast %54 : vector<1x1x64x128xf32> to vector<64x128xf32>
      %56 = arith.addf %55, %47 : vector<64x128xf32>
      %c0_26 = arith.constant 0 : index
      %c1_27 = arith.constant 1 : index
      %c0_28 = arith.constant 0 : index
      %c0_29 = arith.constant 0 : index
      %57 = vector.load %arg5[%c0_26, %c1_27, %c0_28, %c0_29] : memref<1x2x64x128xf32, #tpu.memory_space<vmem>>, vector<1x1x64x128xf32>
      %58 = vector.shape_cast %57 : vector<1x1x64x128xf32> to vector<64x128xf32>
      %59 = vector.shape_cast %56 : vector<64x128xf32> to vector<1x1x64x128xf32>
      tpu.vector_store %arg5[%c0_26, %c1_27, %c0_28, %c0_29], %59 {strides = array<i32>} : memref<1x2x64x128xf32, #tpu.memory_space<vmem>>, vector<1x1x64x128xf32>,
    } else {
    }
    return
  }
  func.func @transform_0(%arg0: i32, %arg1: i32) -> (i32, i32) {
    %c1_i32 = arith.constant 1 : i32
    %0 = arith.muli %arg0, %c1_i32 : i32
    %1 = arith.addi %0, %arg1 : i32
    %c0_i32 = arith.constant 0 : i32
    %2 = arith.minsi %1, %c0_i32 : i32
    %c0_i32_0 = arith.constant 0 : i32
    %c0_i32_1 = arith.constant 0 : i32
    return %2, %c0_i32_0 : i32, i32
  }
  func.func @transform_1(%arg0: i32, %arg1: i32) -> (i32, i32) {
    %c1_i32 = arith.constant 1 : i32
    %0 = arith.muli %arg0, %c1_i32 : i32
    %1 = arith.addi %0, %arg1 : i32
    %c0_i32 = arith.constant 0 : i32
    %2 = arith.minsi %1, %c0_i32 : i32
    %c0_i32_0 = arith.constant 0 : i32
    %c0_i32_1 = arith.constant 0 : i32
    return %2, %c0_i32_0 : i32, i32
  }
  func.func @transform_2(%arg0: i32, %arg1: i32) -> (i32, i32) {
    %c1_i32 = arith.constant 1 : i32
    %0 = arith.muli %arg0, %c1_i32 : i32
    %1 = arith.addi %0, %arg1 : i32
    %c0_i32 = arith.constant 0 : i32
    %2 = arith.minsi %1, %c0_i32 : i32
    %c0_i32_0 = arith.constant 0 : i32
    %c0_i32_1 = arith.constant 0 : i32
    return %2, %c0_i32_0 : i32, i32
  }
  func.func @transform_3(%arg0: i32, %arg1: i32) -> (i32, i32, i32, i32) {
    %c0_i32 = arith.constant 0 : i32
    %c0_i32_0 = arith.constant 0 : i32
    %c0_i32_1 = arith.constant 0 : i32
    %c0_i32_2 = arith.constant 0 : i32
    return %arg0, %c0_i32, %c0_i32_0, %c0_i32_1 : i32, i32, i32, i32
  }
}

</mosaic_0001>

<bundles_post_ra>
// kernel: tpu_custom_call.1
= control target key start
LH: loop header
LB: loop body
LE: loop exit
PB: predicated region body
PF: predicated region fallthrough
CT: control target
= control target key end

     0   :  { %8 = vsyncpa [#allocation3], 0  ;;  %s726_s0 = inlined_call_operand.hbm [shape: f32[64,128], index: 0, kind: input, shape index: {}]   ;;  %s727_s1 = inlined_call_operand.hbm [shape: f32[64,128], index: 1, kind: input, shape index: {}]   ;;  %s728_s2 = inlined_call_operand.hbm [shape: s8[64,128], index: 2, kind: input, shape index: {}]   ;;  %s729_s3 = inlined_call_operand.hbm [shape: f32[1,2,64,128], index: 3, kind: output, shape index: {}]  }
   0x1   :  { %9 = vsyncpa [#allocation6], 0 }
   0x2   :  { %10 = vsyncpa [#allocation4], 0  ;;  %s611_s12 = smov [#allocation5]   ;;  %s612_s14 = smov [#allocation2]  }
   0x3   :  { %s40_s13 = sshll.u32 %s611_s12, 4  ;;  %s22_s15 = sshll.u32 %s612_s14, 4  ;;  %s41_s13 = int_to_ptr.vmem [resolvable:$true] %s40_s13  ;;  %s637_s15 = int_to_ptr.vmem [resolvable:$true] %s22_s15 }
   0x4   :  { %s517_s18 = scalar_lea.hbm %s727_s1, 1024 }
   0x5   :  { %p518_p0 = scmp.ne.s32.totalorder %s727_s1, %s517_s18  ;;  %p521_p1 = scmp.lt.u32.totalorder %s517_s18, %s727_s1 }
   0x7   :  { %p523_p2 = pnand %p521_p1, %p518_p0 }
   0x9   :  { %526 = shalt.err (!%p523_p2)
}
   0xa   :  { %s527_s23 = scalar_lea.vmem %s41_s13, 1024  ;;  %p532_p4 = scmp.lt.s32.totalorder %s41_s13, %s41_s13 }
   0xb   :  { %p528_p3 = scmp.ne.s32.totalorder %s41_s13, %s527_s23  ;;  %p533_p5 = scmp.lt.s32.totalorder %s527_s23, %s527_s23 }
   0xd   :  { %p534_p6 = por %p533_p5, %p532_p4 }
   0xf   :  { %p535_p7 = pnand %p534_p6, %p528_p3 }
  0x11   :  { %538 = shalt.err (!%p535_p7)
}
  0x12   :  { %s613_s24 = smov 128   ;;  %s614_s25 = smov 8  }
  0x13   :  { %46 = dma.hbm_to_vmem [thread:$0]  %s727_s1, 1024, %s41_s13, [#allocation6], %s613_s24, %s613_s24, %s614_s25  }
  0x14   :  { %s539_s30 = scalar_lea.hbm %s726_s0, 1024 }
  0x15   :  { %p540_p8 = scmp.ne.s32.totalorder %s726_s0, %s539_s30  ;;  %p543_p9 = scmp.lt.u32.totalorder %s539_s30, %s726_s0 }
  0x17   :  { %p545_p10 = pnand %p543_p9, %p540_p8 }
  0x19   :  { %548 = shalt.err (!%p545_p10)
}
  0x1a   :  { %s549_s8 = scalar_lea.vmem %s637_s15, 1024  ;;  %p554_p12 = scmp.lt.s32.totalorder %s637_s15, %s637_s15 }
  0x1b   :  { %p550_p11 = scmp.ne.s32.totalorder %s637_s15, %s549_s8  ;;  %p555_p13 = scmp.lt.s32.totalorder %s549_s8, %s549_s8 }
  0x1d   :  { %p556_p0 = por %p555_p13, %p554_p12 }
  0x1f   :  { %p557_p1 = pnand %p556_p0, %p550_p11 }
  0x21   :  { %560 = shalt.err (!%p557_p1)
}
  0x22   :  { %28 = dma.hbm_to_vmem [thread:$0]  %s726_s0, 1024, %s637_s15, [#allocation3], %s613_s24, %s613_s24, %s614_s25  }
  0x23   :  { %s615_s10 = smov [#allocation7]   ;;  %s561_s14 = scalar_lea.hbm %s728_s2, 256 }
  0x24   :  { %s58_s11 = sshll.u32 %s615_s10, 4  ;;  %p562_p2 = scmp.ne.s32.totalorder %s728_s2, %s561_s14  ;;  %s59_s11 = int_to_ptr.vmem [resolvable:$true] %s58_s11 }
  0x25   :  { %p565_p3 = scmp.lt.u32.totalorder %s561_s14, %s728_s2 }
  0x27   :  { %p567_p4 = pnand %p565_p3, %p562_p2 }
  0x29   :  { %570 = shalt.err (!%p567_p4)
}
  0x2a   :  { %s571_s20 = scalar_lea.vmem %s59_s11, 256  ;;  %p576_p6 = scmp.lt.s32.totalorder %s59_s11, %s59_s11 }
  0x2b   :  { %p572_p5 = scmp.ne.s32.totalorder %s59_s11, %s571_s20  ;;  %p577_p7 = scmp.lt.s32.totalorder %s571_s20, %s571_s20 }
  0x2d   :  { %p578_p8 = por %p577_p7, %p576_p6 }
  0x2f   :  { %p579_p9 = pnand %p578_p8, %p572_p5 }
  0x31   :  { %582 = shalt.err (!%p579_p9)
}
  0x32   :  { %64 = dma.hbm_to_vmem [thread:$0]  %s728_s2, 256, %s59_s11, [#allocation6], %s613_s24, %s613_s24, %s614_s25  }
  0x33   :  { %605 = dma.done.wait [#allocation3], 1024  }
  0x34   :  { %606 = vsyncadd [#allocation3], 4294966272 }
  0x35   :  { %607 = dma.done.wait [#allocation6], 1280  }
  0x36   :  { %608 = vsyncadd [#allocation6], 4294966016  ;;  %v113_v0 = vld [vmem:[#allocation2] sm:$0xff]  ;;  %v114_v5 = vld [vmem:[#allocation2 + $0x8] sm:$0xff]  ;;  %s616_s2 = smov [#allocation8]  }
  0x37   :  { %v121_v1 = vld [vmem:[#allocation5] sm:$0xff]  ;;  %v122_v6 = vld [vmem:[#allocation5 + $0x8] sm:$0xff]  ;;  %v115_v8 = vld [vmem:[#allocation2 + $0x10] sm:$0xff]  ;;  %s491_s21 = sshll.u32 %s616_s2, 4  ;;  %s492_s21 = int_to_ptr.vmem [resolvable:$true] %s491_s21 }
  0x38   :  { %v177_v2 = vld [vmem:[#allocation7] sm:$0xff]  ;;  %v129_v3 = vsub.f32 %v113_v0, %v121_v1  ;;  %v130_v10 = vsub.f32 %v114_v5, %v122_v6  ;;  %v123_v11 = vld [vmem:[#allocation5 + $0x10] sm:$0xff]  ;;  %v116_v12 = vld [vmem:[#allocation2 + $0x18] sm:$0xff]  ;;  %s583_s22 = scalar_lea.vmem %s492_s21, 2048  ;;  %p588_p11 = scmp.lt.s32.totalorder %s492_s21, %s492_s21 }
  0x39   :  { %v179_v4 = vunpack.c.0.s8 %v177_v2  ;;  %v180_v7 = vunpack.c.1.s8 %v177_v2  ;;  %v181_v9 = vunpack.c.2.s8 %v177_v2  ;;  %v124_v13 = vld [vmem:[#allocation5 + $0x18] sm:$0xff]  ;;  %v182_v14 = vunpack.c.3.s8 %v177_v2  ;;  %v117_v19 = vld [vmem:[#allocation2 + $0x20] sm:$0xff]  ;;  %v693_v21 = vld [vmem:[#allocation7 + $0x8] sm:$0xff]  ;;  %p584_p10 = scmp.ne.s32.totalorder %s492_s21, %s583_s22  ;;  %p589_p12 = scmp.lt.s32.totalorder %s583_s22, %s583_s22 }
  0x3a   :  { %v137_v15 = vand.u32 2147483647, %v129_v3  ;;  %v131_v18 = vsub.f32 %v115_v8, %v123_v11  ;;  %v125_v20 = vld [vmem:[#allocation5 + $0x20] sm:$0xff]  ;;  %v138_v22 = vand.u32 2147483647, %v130_v10  ;;  %v132_v24 = vsub.f32 %v116_v12, %v124_v13  ;;  %v118_v26 = vld [vmem:[#allocation2 + $0x28] sm:$0xff] }
  0x3b   :  { %v689_v16 = vcvt.s32.f32 %v179_v4  ;;  %v691_v17 = vcvt.s32.f32 %v180_v7  ;;  %v695_v23 = vcvt.s32.f32 %v181_v9  ;;  %v697_v25 = vcvt.s32.f32 %v182_v14  ;;  %v126_v27 = vld [vmem:[#allocation5 + $0x28] sm:$0xff]  ;;  %v119_v36 = vld [vmem:[#allocation2 + $0x30] sm:$0xff]  ;;  %v120_v58 = vld [vmem:[#allocation2 + $0x38] sm:$0xff]  ;;  %p590_p13 = por %p589_p12, %p588_p11 }
  0x3c   :  { %v145_v28 = vmin.f32 %v137_v15, 1.0  ;;  %v139_v29 = vand.u32 2147483647, %v131_v18  ;;  %v133_v30 = vsub.f32 %v117_v19, %v125_v20  ;;  %v183_v31 = vunpack.c.0.s8 %v693_v21  ;;  %v127_v37 = vld [vmem:[#allocation5 + $0x30] sm:$0xff]  ;;  %v128_v59 = vld [vmem:[#allocation5 + $0x38] sm:$0xff] }
  0x3d   :  { %v146_v32 = vmin.f32 %v138_v22, 1.0  ;;  %v140_v33 = vand.u32 2147483647, %v132_v24  ;;  %v134_v34 = vsub.f32 %v118_v26, %v126_v27  ;;  %v184_v35 = vunpack.c.1.s8 %v693_v21  ;;  %260 = vst [vmem:[#allocation8 + $0x40] sm:$0xff] %v689_v16  ;;  %261 = vst [vmem:[#allocation8 + $0x48] sm:$0xff] %v691_v17  ;;  %p591_p0 = pnand %p590_p13, %p584_p10 }
  0x3e   :  { %v153_v38 = vmul.f32 0.5, %v145_v28  ;;  %v147_v39 = vmin.f32 %v139_v29, 1.0  ;;  %v141_v40 = vand.u32 2147483647, %v133_v30  ;;  %v191_v41 = vcvt.s32.f32 %v183_v31  ;;  %262 = vst [vmem:[#allocation8 + $0x50] sm:$0xff] %v695_v23  ;;  %263 = vst [vmem:[#allocation8 + $0x58] sm:$0xff] %v697_v25 }
  0x3f   :  { %v154_v42 = vmul.f32 0.5, %v146_v32  ;;  %v148_v43 = vmin.f32 %v140_v33, 1.0  ;;  %v142_v44 = vand.u32 2147483647, %v134_v34  ;;  %v192_v45 = vcvt.s32.f32 %v184_v35 }
  0x40   :  { %v161_v46 = vsub.f32 %v137_v15, %v153_v38  ;;  %v155_v47 = vmul.f32 0.5, %v147_v39  ;;  %v149_v48 = vmin.f32 %v141_v40, 1.0  ;;  %v135_v49 = vsub.f32 %v119_v36, %v127_v37  ;;  %264 = vst [vmem:[#allocation8 + $0x60] sm:$0xff] %v191_v41 }
  0x41   :  { %v162_v50 = vsub.f32 %v138_v22, %v154_v42  ;;  %v156_v51 = vmul.f32 0.5, %v148_v43  ;;  %v150_v52 = vmin.f32 %v142_v44, 1.0  ;;  %v185_v53 = vunpack.c.2.s8 %v693_v21  ;;  %265 = vst [vmem:[#allocation8 + $0x68] sm:$0xff] %v192_v45 }
  0x42   :  { %v169_v54 = vmul.f32 %v161_v46, %v145_v28  ;;  %v163_v55 = vsub.f32 %v139_v29, %v155_v47  ;;  %v157_v56 = vmul.f32 0.5, %v149_v48  ;;  %v143_v57 = vand.u32 2147483647, %v135_v49 }
  0x43   :  { %v170_v60 = vmul.f32 %v162_v50, %v146_v32  ;;  %v164_v61 = vsub.f32 %v140_v33, %v156_v51  ;;  %v158_v62 = vmul.f32 0.5, %v150_v52  ;;  %v193_v63 = vcvt.s32.f32 %v185_v53 }
  0x44   :  { %v195_v0 = vmul.f32 %v689_v16, %v169_v54  ;;  %v171_v1 = vmul.f32 %v163_v55, %v147_v39  ;;  %v165_v2 = vsub.f32 %v141_v40, %v157_v56  ;;  %v151_v3 = vmin.f32 %v143_v57, 1.0 }
  0x45   :  { %v196_v4 = vmul.f32 %v691_v17, %v170_v60  ;;  %v172_v5 = vmul.f32 %v164_v61, %v148_v43  ;;  %v166_v6 = vsub.f32 %v142_v44, %v158_v62  ;;  %v136_v7 = vsub.f32 %v120_v58, %v128_v59  ;;  %266 = vst [vmem:[#allocation8 + $0x70] sm:$0xff] %v193_v63 }
  0x46   :  { %v197_v8 = vmul.f32 %v695_v23, %v171_v1  ;;  %v173_v9 = vmul.f32 %v165_v2, %v149_v48  ;;  %v159_v10 = vmul.f32 0.5, %v151_v3  ;;  %235 = vst [vmem:[#allocation8] sm:$0xff] %v195_v0  ;;  %v186_v18 = vunpack.c.3.s8 %v693_v21 }
  0x47   :  { %v198_v11 = vmul.f32 %v697_v25, %v172_v5  ;;  %v174_v12 = vmul.f32 %v166_v6, %v150_v52  ;;  %v144_v13 = vand.u32 2147483647, %v136_v7  ;;  %236 = vst [vmem:[#allocation8 + $0x8] sm:$0xff] %v196_v4 }
  0x48   :  { %v199_v14 = vmul.f32 %v191_v41, %v173_v9  ;;  %v167_v15 = vsub.f32 %v143_v57, %v159_v10  ;;  %237 = vst [vmem:[#allocation8 + $0x10] sm:$0xff] %v197_v8  ;;  %v194_v24 = vcvt.s32.f32 %v186_v18 }
  0x49   :  { %v200_v19 = vmul.f32 %v192_v45, %v174_v12  ;;  %v152_v20 = vmin.f32 %v144_v13, 1.0  ;;  %238 = vst [vmem:[#allocation8 + $0x18] sm:$0xff] %v198_v11 }
  0x4a   :  { %v175_v22 = vmul.f32 %v167_v15, %v151_v3  ;;  %239 = vst [vmem:[#allocation8 + $0x20] sm:$0xff] %v199_v14  ;;  %267 = vst [vmem:[#allocation8 + $0x78] sm:$0xff] %v194_v24 }
  0x4b   :  { %v160_v26 = vmul.f32 0.5, %v152_v20  ;;  %240 = vst [vmem:[#allocation8 + $0x28] sm:$0xff] %v200_v19 }
  0x4c   :  { %v201_v27 = vmul.f32 %v193_v63, %v175_v22 }
  0x4d   :  { %v168_v28 = vsub.f32 %v144_v13, %v160_v26 }
  0x4e   :  { %241 = vst [vmem:[#allocation8 + $0x30] sm:$0xff] %v201_v27 }
  0x4f   :  { %v176_v21 = vmul.f32 %v168_v28, %v152_v20 }
  0x51   :  { %v202_v29 = vmul.f32 %v194_v24, %v176_v21 }
  0x53   :  { %242 = vst [vmem:[#allocation8 + $0x38] sm:$0xff] %v202_v29 }
  0x54   :  { %594 = shalt.err (!%p591_p0)
}
  0x55   :  { %s595_s27 = scalar_lea.hbm %s729_s3, 2048 }
  0x56   :  { %p596_p1 = scmp.ne.s32.totalorder %s729_s3, %s595_s27  ;;  %p599_p2 = scmp.lt.u32.totalorder %s595_s27, %s729_s3 }
  0x58   :  { %p601_p3 = pnand %p599_p2, %p596_p1 }
  0x5a   :  { %604 = shalt.err (!%p601_p3)
}
  0x5b   :  { %497 = dma.vmem_to_hbm [thread:$0]  %s492_s21, 2048, %s729_s3, [#allocation4], %s613_s24, %s613_s24, %s614_s25  }
  0x5c   :  { %609 = dma.done.wait [#allocation4], 2048  }
  0x5d   :  { %610 = vsyncadd [#allocation4], 4294965248 }
  0x5e   :  { %501 = vsyncpa [#allocation3], 1 }
  0x5f   :  { %502 = vsyncpa [#allocation6], 1 }
  0x60   :  { %503 = vsyncpa [#allocation4], 1 }

</bundles_post_ra>
